<compile_context>
chip_gen: v7x
topology: tpu7x:2x2x1
jax: 0.10.0
libtpu: 0.0.40
codegen_flags: <defaults>
</compile_context>

<pallas_src>
import functools

import jax
import jax.numpy as jnp
from jax.experimental import pallas as pl
from jax.experimental.pallas import tpu as pltpu
from jax.scipy.linalg import block_diag

F_IN = 111        # 105 + 5 + 1 input features
N_LAYERS = 5      # fused layer count (encL1, encL2, encL3@ffnn0, ffnn1, linear)
LAYERS = 2        # config['layers']


def _round_up(n, m):
    return ((n + m - 1) // m) * m


def _cdiv(a, b):
    return -(-a // b)


def _pad2(a, shape):
    return jnp.pad(a, [(0, t - s) for t, s in zip(shape, a.shape)])


def _bf16_elementwise_ok():
    """bf16 VPU/EUP exists on v6e / v7x; keep f32 elementwise math elsewhere."""
    try:
        kind = jax.devices()[0].device_kind.lower()
    except Exception:
        return False
    return ("v6" in kind) or ("v7" in kind)


# ----------------------------------------------------------------------------
# Kernel: one batch tile, 5 fused (TB,128)@(128,128) MXU passes + log_softmax.
# ----------------------------------------------------------------------------
def cnet_kernel(x_ref, w_ref, b_ref, o_ref, xs_ref, *, act_dtype):
    # TODO(synk): F.dropout omitted -- eval/inference semantics (identity).
    tb = xs_ref.shape[0]

    # Stage input in-kernel: f32 (tb,111) -> bf16, zero-padded to 128 lanes.
    # Padded lanes hit zero-padded weight rows, so results are exact.
    xs_ref[:, F_IN:] = jnp.zeros((tb, 128 - F_IN), dtype=xs_ref.dtype)
    xs_ref[:, :F_IN] = x_ref[...].astype(jnp.bfloat16)
    h = xs_ref[...]                                    # (tb, 128) bf16

    b_f32 = b_ref[...]                                 # (5, 128) f32
    b_act = b_f32.astype(act_dtype)                    # bf16 on v6e/v7x, f32 on v5e

    def act_layer(h_in, k):
        y = jnp.dot(h_in, w_ref[k], preferred_element_type=jnp.float32)
        y = y.astype(act_dtype) + b_act[k]             # bias add + tanh in act_dtype
        return jnp.tanh(y).astype(jnp.bfloat16)        # bf16 for the next MXU pass

    # 0: blkdiag enc L1 (111->114) + tanh
    # 1: blkdiag enc L2 (114-> 24) + tanh
    # 2: fused  enc L3 @ ffnn[0] (24->2) + tanh      (exact pack-time fusion)
    # 3: ffnn[1] (2->10) + tanh (the Tanh at the head of self.linear)
    for k in range(4):
        h = act_layer(h, k)

    # 4: final Linear(10->2); f32 logits live in lanes 0..1
    z = jnp.dot(h, w_ref[4], preferred_element_type=jnp.float32) + b_f32[4]

    # Closed-form 2-class log_softmax: out = [-softplus(d), -softplus(-d)]
    d = z[:, 1:2] - z[:, 0:1]                                     # (tb, 1)
    sp = jnp.maximum(d, 0.0) + jnp.log1p(jnp.exp(-jnp.abs(d)))    # stable softplus(d)
    o_ref[:, 0:1] = -sp
    o_ref[:, 1:2] = d - sp                                        # == -softplus(-d)


# ----------------------------------------------------------------------------
# Parameter packing (trace-time): 24 tensors -> 2 slabs, enc-L3 fused w/ ffnn0.
# ----------------------------------------------------------------------------
def pack_params(params):
    (w11, b11, w12, b12, w13, b13,
     w21, b21, w22, b22, w23, b23,
     w31, b31, w32, b32, w33, b33,
     fw0, fb0, fw1, fb1, lw, lb) = params

    w_l3 = block_diag(w13, w23, w33)                        # (24, 6)
    b_l3 = jnp.concatenate([b13, b23, b33], axis=-1)        # (1, 6)
    w_34 = w_l3 @ fw0                                       # (24, 2)  exact fusion
    b_34 = b_l3 @ fw0 + fb0                                 # (1, 2)

    layer_ws = [
        block_diag(w11, w21, w31),    # (111, 114)
        block_diag(w12, w22, w32),    # (114,  24)
        w_34,                         # ( 24,   2)
        fw1,                          # (  2,  10)
        lw,                           # ( 10,   2)
    ]
    layer_bs = [
        jnp.concatenate([b11, b21, b31], axis=-1),   # (1, 114)
        jnp.concatenate([b12, b22, b32], axis=-1),   # (1,  24)
        b_34, fb1, lb,
    ]
    w_slab = jnp.stack([_pad2(w, (128, 128)) for w in layer_ws]
                       ).astype(jnp.bfloat16)                         # (5,128,128)
    b_slab = jnp.concatenate([_pad2(bb.reshape(1, -1), (1, 128))
                              for bb in layer_bs], axis=0
                             ).astype(jnp.float32)                    # (5,128)
    return w_slab, b_slab


# ----------------------------------------------------------------------------
# Wrapper: batch grid over raw f32 input, replicated parameter slabs.
# ----------------------------------------------------------------------------
def _choose_tb(B, tb_max=1024):
    b16 = max(16, _round_up(B, 16))
    if b16 <= 32:
        return b16                                    # too small to split
    # >= 2 grid steps (v7x megacore), tiles are multiples of 16, capped for VMEM
    return min(tb_max, _round_up(_cdiv(B, 2), 16))


def cnet_forward(x, w_slab, b_slab, *, tb_max=1024):
    B, F = x.shape
    assert F == F_IN
    tb = _choose_tb(B, tb_max)
    grid = (_cdiv(B, tb),)

    cost = pl.CostEstimate(
        flops=2 * B * 128 * 128 * N_LAYERS,
        transcendentals=B * (4 * 128 + 2),
        bytes_accessed=B * F_IN * 4 + B * 2 * 4
                       + N_LAYERS * 128 * 128 * 2 + N_LAYERS * 128 * 4,
    )

    kernel = functools.partial(
        cnet_kernel,
        act_dtype=jnp.bfloat16 if _bf16_elementwise_ok() else jnp.float32)

    out = pl.pallas_call(
        kernel,
        out_shape=jax.ShapeDtypeStruct((B, 2), jnp.float32),
        grid_spec=pltpu.PrefetchScalarGridSpec(
            num_scalar_prefetch=0,
            grid=grid,
            in_specs=[
                pl.BlockSpec((tb, F_IN), lambda i: (i, 0)),               # raw f32 x
                pl.BlockSpec((N_LAYERS, 128, 128), lambda i: (0, 0, 0)),  # weight slab
                pl.BlockSpec((N_LAYERS, 128), lambda i: (0, 0)),          # bias slab
            ],
            out_specs=pl.BlockSpec((tb, 2), lambda i: (i, 0)),
            scratch_shapes=[pltpu.VMEM((tb, 128), jnp.bfloat16)],         # x staging
        ),
        compiler_params=pltpu.CompilerParams(
            dimension_semantics=("parallel",)),
        cost_estimate=cost,
    )(x, w_slab, b_slab)
    return out


# ----------------------------------------------------------------------------
# Deterministic synthetic init (PyTorch-Linear-style U(-1/sqrt(fan_in), +)).
# ----------------------------------------------------------------------------
def init_params(key):
    shapes = [
        (105, 100), (100, 10), (10, 2),    # enc1
        (5, 10), (10, 10), (10, 2),        # enc2
        (1, 4), (4, 4), (4, 2),            # enc3
        (6, 2), (2, 10),                   # ffnn (LAYERS = 2)
        (10, 2),                           # final linear
    ]
    params = []
    keys = jax.random.split(key, 2 * len(shapes))
    for i, (fan_in, fan_out) in enumerate(shapes):
        bound = 1.0 / jnp.sqrt(float(fan_in))
        w = jax.random.uniform(keys[2 * i], (fan_in, fan_out),
                               minval=-bound, maxval=bound, dtype=jnp.float32)
        b = jax.random.uniform(keys[2 * i + 1], (1, fan_out),
                               minval=-bound, maxval=bound, dtype=jnp.float32)
        params += [w, b]
    return params


# Pure-JAX reference (f32, unfused) for correctness checking.
def cnet_reference(x, params):
    (w11, b11, w12, b12, w13, b13,
     w21, b21, w22, b22, w23, b23,
     w31, b31, w32, b32, w33, b33,
     fw0, fb0, fw1, fb1, lw, lb) = params
    x1, x2, x3 = x[:, :105], x[:, 105:110], x[:, 110:111]
    e1 = jnp.tanh(x1 @ w11 + b11); e1 = jnp.tanh(e1 @ w12 + b12); e1 = e1 @ w13 + b13
    e2 = jnp.tanh(x2 @ w21 + b21); e2 = jnp.tanh(e2 @ w22 + b22); e2 = e2 @ w23 + b23
    e3 = jnp.tanh(x3 @ w31 + b31); e3 = jnp.tanh(e3 @ w32 + b32); e3 = e3 @ w33 + b33
    out = jnp.concatenate([e1, e2, e3], axis=1)
    out = jnp.tanh(out @ fw0 + fb0)
    out = out @ fw1 + fb1
    z = jnp.tanh(out) @ lw + lb
    return jax.nn.log_softmax(z, axis=-1)


if __name__ == "__main__":
    key = jax.random.PRNGKey(0)
    kx, kp = jax.random.split(key)
    B = 16
    x = jax.random.normal(kx, (B, F_IN), dtype=jnp.float32)   # 105 + 5 + 1 features
    params = init_params(kp)
    w_slab, b_slab = pack_params(params)

    out = jax.block_until_ready(cnet_forward(x, w_slab, b_slab))
    ref = cnet_reference(x, params)

    assert out.shape == (B, 2)
    # log_softmax rows must sum (in prob space) to ~1
    assert jnp.allclose(jnp.sum(jnp.exp(out), axis=-1), 1.0, atol=1e-4)
    # matches f32 reference up to bf16 matmul/tanh rounding
    assert float(jnp.max(jnp.abs(out - ref))) < 7.5e-2
    print("KERNEL_OK")
</pallas_src>

<mosaic_0001>
module attributes {stable_mosaic.version = 11 : i64} {
  func.func @cnet_kernel(%arg0: i32, %arg1: memref<16x111xf32, #tpu.memory_space<vmem>>, %arg2: memref<5x128x128xbf16, #tpu.memory_space<vmem>>, %arg3: memref<5x128xf32, #tpu.memory_space<vmem>>, %arg4: memref<16x2xf32, #tpu.memory_space<vmem>>, %arg5: memref<16x128xbf16, #tpu.memory_space<vmem>>) attributes {dimension_semantics = [#tpu.dimension_semantics<parallel>], iteration_bounds = array<i64: 1>, scalar_prefetch = 0 : i64, scratch_operands = 1 : i64, tpu.core_type = #tpu.core_type<tc>, window_params = [{transform_indices = @transform_0, window_bounds = array<i64: 16, 111>}, {pipeline_mode = #tpu.pipeline_mode<synchronous>, transform_indices = @transform_1, window_bounds = array<i64: 5, 128, 128>}, {pipeline_mode = #tpu.pipeline_mode<synchronous>, transform_indices = @transform_2, window_bounds = array<i64: 5, 128>}, {transform_indices = @transform_3, window_bounds = array<i64: 16, 2>}]} {
    %cst = arith.constant 0.000000e+00 : bf16
    %0 = vector.broadcast %cst : bf16 to vector<16x17xbf16>
    %c0 = arith.constant 0 : index
    %c111 = arith.constant 111 : index
    %1 = vector.load %arg5[%c0, %c111] : memref<16x128xbf16, #tpu.memory_space<vmem>>, vector<16x17xbf16>
    tpu.vector_store %arg5[%c0, %c111], %0 {strides = array<i32>} : memref<16x128xbf16, #tpu.memory_space<vmem>>, vector<16x17xbf16>,
    %c0_0 = arith.constant 0 : index
    %c0_1 = arith.constant 0 : index
    %2 = vector.load %arg1[%c0_0, %c0_1] : memref<16x111xf32, #tpu.memory_space<vmem>>, vector<16x111xf32>
    %3 = arith.truncf %2 : vector<16x111xf32> to vector<16x111xbf16>
    %c0_2 = arith.constant 0 : index
    %c0_3 = arith.constant 0 : index
    %4 = vector.load %arg5[%c0_2, %c0_3] : memref<16x128xbf16, #tpu.memory_space<vmem>>, vector<16x111xbf16>
    tpu.vector_store %arg5[%c0_2, %c0_3], %3 {strides = array<i32>} : memref<16x128xbf16, #tpu.memory_space<vmem>>, vector<16x111xbf16>,
    %c0_4 = arith.constant 0 : index
    %c0_5 = arith.constant 0 : index
    %5 = vector.load %arg5[%c0_4, %c0_5] : memref<16x128xbf16, #tpu.memory_space<vmem>>, vector<16x128xbf16>
    %c0_6 = arith.constant 0 : index
    %c0_7 = arith.constant 0 : index
    %6 = vector.load %arg3[%c0_6, %c0_7] : memref<5x128xf32, #tpu.memory_space<vmem>>, vector<5x128xf32>
    %c0_8 = arith.constant 0 : index
    %c0_9 = arith.constant 0 : index
    %c0_10 = arith.constant 0 : index
    %7 = vector.load %arg2[%c0_8, %c0_9, %c0_10] : memref<5x128x128xbf16, #tpu.memory_space<vmem>>, vector<1x128x128xbf16>
    %8 = vector.shape_cast %7 : vector<1x128x128xbf16> to vector<128x128xbf16>
    %cst_11 = arith.constant dense<0.000000e+00> : vector<16x128xf32>
    %9 = tpu.matmul %5, %8, %cst_11 {dimension_numbers = #tpu.dot_dimension_numbers<[1], [0], [0], [1], [0, 0, 1, 1], [], []>} : vector<16x128xbf16>, vector<128x128xbf16>, vector<16x128xf32> -> vector<16x128xf32>
    %10 = vector.extract_strided_slice %6 {offsets = [0, 0], sizes = [1, 128], strides = [1, 1]} : vector<5x128xf32> to vector<1x128xf32>
    %11 = vector.shape_cast %10 : vector<1x128xf32> to vector<128xf32>
    %12 = vector.shape_cast %11 : vector<128xf32> to vector<1x128xf32>
    %13 = vector.broadcast %12 : vector<1x128xf32> to vector<16x128xf32>
    %14 = arith.addf %9, %13 : vector<16x128xf32>
    %15 = math.tanh %14 : vector<16x128xf32>
    %16 = arith.truncf %15 : vector<16x128xf32> to vector<16x128xbf16>
    %c1 = arith.constant 1 : index
    %c0_12 = arith.constant 0 : index
    %c0_13 = arith.constant 0 : index
    %17 = vector.load %arg2[%c1, %c0_12, %c0_13] : memref<5x128x128xbf16, #tpu.memory_space<vmem>>, vector<1x128x128xbf16>
    %18 = vector.shape_cast %17 : vector<1x128x128xbf16> to vector<128x128xbf16>
    %cst_14 = arith.constant dense<0.000000e+00> : vector<16x128xf32>
    %19 = tpu.matmul %16, %18, %cst_14 {dimension_numbers = #tpu.dot_dimension_numbers<[1], [0], [0], [1], [0, 0, 1, 1], [], []>} : vector<16x128xbf16>, vector<128x128xbf16>, vector<16x128xf32> -> vector<16x128xf32>
    %20 = vector.extract_strided_slice %6 {offsets = [1, 0], sizes = [1, 128], strides = [1, 1]} : vector<5x128xf32> to vector<1x128xf32>
    %21 = vector.shape_cast %20 : vector<1x128xf32> to vector<128xf32>
    %22 = vector.shape_cast %21 : vector<128xf32> to vector<1x128xf32>
    %23 = vector.broadcast %22 : vector<1x128xf32> to vector<16x128xf32>
    %24 = arith.addf %19, %23 : vector<16x128xf32>
    %25 = math.tanh %24 : vector<16x128xf32>
    %26 = arith.truncf %25 : vector<16x128xf32> to vector<16x128xbf16>
    %c2 = arith.constant 2 : index
    %c0_15 = arith.constant 0 : index
    %c0_16 = arith.constant 0 : index
    %27 = vector.load %arg2[%c2, %c0_15, %c0_16] : memref<5x128x128xbf16, #tpu.memory_space<vmem>>, vector<1x128x128xbf16>
    %28 = vector.shape_cast %27 : vector<1x128x128xbf16> to vector<128x128xbf16>
    %cst_17 = arith.constant dense<0.000000e+00> : vector<16x128xf32>
    %29 = tpu.matmul %26, %28, %cst_17 {dimension_numbers = #tpu.dot_dimension_numbers<[1], [0], [0], [1], [0, 0, 1, 1], [], []>} : vector<16x128xbf16>, vector<128x128xbf16>, vector<16x128xf32> -> vector<16x128xf32>
    %30 = vector.extract_strided_slice %6 {offsets = [2, 0], sizes = [1, 128], strides = [1, 1]} : vector<5x128xf32> to vector<1x128xf32>
    %31 = vector.shape_cast %30 : vector<1x128xf32> to vector<128xf32>
    %32 = vector.shape_cast %31 : vector<128xf32> to vector<1x128xf32>
    %33 = vector.broadcast %32 : vector<1x128xf32> to vector<16x128xf32>
    %34 = arith.addf %29, %33 : vector<16x128xf32>
    %35 = math.tanh %34 : vector<16x128xf32>
    %36 = arith.truncf %35 : vector<16x128xf32> to vector<16x128xbf16>
    %c3 = arith.constant 3 : index
    %c0_18 = arith.constant 0 : index
    %c0_19 = arith.constant 0 : index
    %37 = vector.load %arg2[%c3, %c0_18, %c0_19] : memref<5x128x128xbf16, #tpu.memory_space<vmem>>, vector<1x128x128xbf16>
    %38 = vector.shape_cast %37 : vector<1x128x128xbf16> to vector<128x128xbf16>
    %cst_20 = arith.constant dense<0.000000e+00> : vector<16x128xf32>
    %39 = tpu.matmul %36, %38, %cst_20 {dimension_numbers = #tpu.dot_dimension_numbers<[1], [0], [0], [1], [0, 0, 1, 1], [], []>} : vector<16x128xbf16>, vector<128x128xbf16>, vector<16x128xf32> -> vector<16x128xf32>
    %40 = vector.extract_strided_slice %6 {offsets = [3, 0], sizes = [1, 128], strides = [1, 1]} : vector<5x128xf32> to vector<1x128xf32>
    %41 = vector.shape_cast %40 : vector<1x128xf32> to vector<128xf32>
    %42 = vector.shape_cast %41 : vector<128xf32> to vector<1x128xf32>
    %43 = vector.broadcast %42 : vector<1x128xf32> to vector<16x128xf32>
    %44 = arith.addf %39, %43 : vector<16x128xf32>
    %45 = math.tanh %44 : vector<16x128xf32>
    %46 = arith.truncf %45 : vector<16x128xf32> to vector<16x128xbf16>
    %c4 = arith.constant 4 : index
    %c0_21 = arith.constant 0 : index
    %c0_22 = arith.constant 0 : index
    %47 = vector.load %arg2[%c4, %c0_21, %c0_22] : memref<5x128x128xbf16, #tpu.memory_space<vmem>>, vector<1x128x128xbf16>
    %48 = vector.shape_cast %47 : vector<1x128x128xbf16> to vector<128x128xbf16>
    %cst_23 = arith.constant dense<0.000000e+00> : vector<16x128xf32>
    %49 = tpu.matmul %46, %48, %cst_23 {dimension_numbers = #tpu.dot_dimension_numbers<[1], [0], [0], [1], [0, 0, 1, 1], [], []>} : vector<16x128xbf16>, vector<128x128xbf16>, vector<16x128xf32> -> vector<16x128xf32>
    %50 = vector.extract_strided_slice %6 {offsets = [4, 0], sizes = [1, 128], strides = [1, 1]} : vector<5x128xf32> to vector<1x128xf32>
    %51 = vector.shape_cast %50 : vector<1x128xf32> to vector<128xf32>
    %52 = vector.shape_cast %51 : vector<128xf32> to vector<1x128xf32>
    %53 = vector.broadcast %52 : vector<1x128xf32> to vector<16x128xf32>
    %54 = arith.addf %49, %53 : vector<16x128xf32>
    %55 = vector.extract_strided_slice %54 {offsets = [0, 1], sizes = [16, 1], strides = [1, 1]} : vector<16x128xf32> to vector<16x1xf32>
    %56 = vector.extract_strided_slice %54 {offsets = [0, 0], sizes = [16, 1], strides = [1, 1]} : vector<16x128xf32> to vector<16x1xf32>
    %57 = arith.subf %55, %56 : vector<16x1xf32>
    %cst_24 = arith.constant 0.000000e+00 : f32
    %58 = vector.broadcast %cst_24 : f32 to vector<16x1xf32>
    %59 = arith.maximumf %57, %58 : vector<16x1xf32>
    %60 = math.absf %57 : vector<16x1xf32>
    %cst_25 = arith.constant 0.000000e+00 : f32
    %61 = vector.broadcast %cst_25 : f32 to vector<16x1xf32>
    %62 = arith.subf %61, %60 : vector<16x1xf32>
    %63 = math.exp %62 : vector<16x1xf32>
    %64 = math.log1p %63 : vector<16x1xf32>
    %65 = arith.addf %59, %64 : vector<16x1xf32>
    %cst_26 = arith.constant 0.000000e+00 : f32
    %66 = vector.broadcast %cst_26 : f32 to vector<16x1xf32>
    %67 = arith.subf %66, %65 : vector<16x1xf32>
    %c0_27 = arith.constant 0 : index
    %c0_28 = arith.constant 0 : index
    %68 = vector.load %arg4[%c0_27, %c0_28] : memref<16x2xf32, #tpu.memory_space<vmem>>, vector<16x1xf32>
    tpu.vector_store %arg4[%c0_27, %c0_28], %67 {strides = array<i32>} : memref<16x2xf32, #tpu.memory_space<vmem>>, vector<16x1xf32>,
    %69 = arith.subf %57, %65 : vector<16x1xf32>
    %c0_29 = arith.constant 0 : index
    %c1_30 = arith.constant 1 : index
    %70 = vector.load %arg4[%c0_29, %c1_30] : memref<16x2xf32, #tpu.memory_space<vmem>>, vector<16x1xf32>
    tpu.vector_store %arg4[%c0_29, %c1_30], %69 {strides = array<i32>} : memref<16x2xf32, #tpu.memory_space<vmem>>, vector<16x1xf32>,
    return
  }
  func.func @transform_0(%arg0: i32) -> (i32, i32) {
    %c0_i32 = arith.constant 0 : i32
    %c0_i32_0 = arith.constant 0 : i32
    return %arg0, %c0_i32 : i32, i32
  }
  func.func @transform_1(%arg0: i32) -> (i32, i32, i32) {
    %c0_i32 = arith.constant 0 : i32
    %c0_i32_0 = arith.constant 0 : i32
    %c0_i32_1 = arith.constant 0 : i32
    %c0_i32_2 = arith.constant 0 : i32
    return %c0_i32, %c0_i32_0, %c0_i32_1 : i32, i32, i32
  }
  func.func @transform_2(%arg0: i32) -> (i32, i32) {
    %c0_i32 = arith.constant 0 : i32
    %c0_i32_0 = arith.constant 0 : i32
    %c0_i32_1 = arith.constant 0 : i32
    return %c0_i32, %c0_i32_0 : i32, i32
  }
  func.func @transform_3(%arg0: i32) -> (i32, i32) {
    %c0_i32 = arith.constant 0 : i32
    %c0_i32_0 = arith.constant 0 : i32
    return %arg0, %c0_i32 : i32, i32
  }
}

</mosaic_0001>

<bundles_post_ra>
// kernel: tpu_custom_call.1
= control target key start
LH: loop header
LB: loop body
LE: loop exit
PB: predicated region body
PF: predicated region fallthrough
CT: control target
= control target key end

     0   :  { %8 = vsyncpa [#allocation4], 0  ;;  %s1163_s0 = inlined_call_operand.hbm [shape: f32[16,111], index: 0, kind: input, shape index: {}]   ;;  %s1164_s1 = inlined_call_operand.hbm [shape: bf16[5,128,128], index: 1, kind: input, shape index: {}]   ;;  %s1165_s2 = inlined_call_operand.hbm [shape: f32[5,128], index: 2, kind: input, shape index: {}]   ;;  %s1166_s3 = inlined_call_operand.vmem [shape: f32[16,2], index: 3, kind: output, shape index: {}]  }
   0x1   :  { %9 = vsyncpa [#allocation6], 0  ;;  %s1019_s12 = smov [#allocation5]   ;;  %s949_s16 = scalar_lea.hbm %s1164_s1, 5120 }
   0x2   :  { %s27_s13 = sshll.u32 %s1019_s12, 4  ;;  %p950_p0 = scmp.ne.s32.totalorder %s1164_s1, %s949_s16  ;;  %s28_s13 = int_to_ptr.vmem [resolvable:$true] %s27_s13 }
   0x3   :  { %p953_p1 = scmp.lt.u32.totalorder %s949_s16, %s1164_s1 }
   0x5   :  { %p955_p2 = pnand %p953_p1, %p950_p0 }
   0x7   :  { %958 = shalt.err (!%p955_p2)
}
   0x8   :  { %s959_s21 = scalar_lea.vmem %s28_s13, 5120  ;;  %p964_p4 = scmp.lt.s32.totalorder %s28_s13, %s28_s13 }
   0x9   :  { %p960_p3 = scmp.ne.s32.totalorder %s28_s13, %s959_s21  ;;  %p965_p5 = scmp.lt.s32.totalorder %s959_s21, %s959_s21 }
   0xb   :  { %p966_p6 = por %p965_p5, %p964_p4 }
   0xd   :  { %p967_p7 = pnand %p966_p6, %p960_p3 }
   0xf   :  { %970 = shalt.err (!%p967_p7)
}
  0x10   :  { %s1020_s22 = smov 64   ;;  %s1021_s23 = smov 4  }
  0x11   :  { %33 = dma.hbm_to_vmem [thread:$0]  %s1164_s1, 5120, %s28_s13, [#allocation6], %s1020_s22, %s1020_s22, %s1021_s23  }
  0x12   :  { %s1022_s26 = smov [#allocation3]   ;;  %s971_s30 = scalar_lea.hbm %s1163_s0, 256 }
  0x13   :  { %s15_s27 = sshll.u32 %s1022_s26, 4  ;;  %p972_p8 = scmp.ne.s32.totalorder %s1163_s0, %s971_s30  ;;  %s16_s27 = int_to_ptr.vmem [resolvable:$true] %s15_s27 }
  0x14   :  { %p975_p9 = scmp.lt.u32.totalorder %s971_s30, %s1163_s0 }
  0x16   :  { %p977_p10 = pnand %p975_p9, %p972_p8 }
  0x18   :  { %980 = shalt.err (!%p977_p10)
}
  0x19   :  { %s981_s8 = scalar_lea.vmem %s16_s27, 256  ;;  %p986_p12 = scmp.lt.s32.totalorder %s16_s27, %s16_s27 }
  0x1a   :  { %p982_p11 = scmp.ne.s32.totalorder %s16_s27, %s981_s8  ;;  %p987_p13 = scmp.lt.s32.totalorder %s981_s8, %s981_s8 }
  0x1c   :  { %p988_p0 = por %p987_p13, %p986_p12 }
  0x1e   :  { %p989_p1 = pnand %p988_p0, %p982_p11 }
  0x20   :  { %992 = shalt.err (!%p989_p1)
}
  0x21   :  { %s1023_s1 = smov 128   ;;  %s1024_s9 = smov 8  }
  0x22   :  { %21 = dma.hbm_to_vmem [thread:$0]  %s1163_s0, 256, %s16_s27, [#allocation4], %s1023_s1, %s1023_s1, %s1024_s9  }
  0x23   :  { %s1025_s12 = smov [#allocation7]   ;;  %s993_s16 = scalar_lea.hbm %s1165_s2, 128 }
  0x24   :  { %s40_s13 = sshll.u32 %s1025_s12, 4  ;;  %p994_p2 = scmp.ne.s32.totalorder %s1165_s2, %s993_s16  ;;  %s41_s13 = int_to_ptr.vmem [resolvable:$true] %s40_s13 }
  0x25   :  { %p997_p3 = scmp.lt.u32.totalorder %s993_s16, %s1165_s2 }
  0x27   :  { %p999_p4 = pnand %p997_p3, %p994_p2 }
  0x29   :  { %1002 = shalt.err (!%p999_p4)
}
  0x2a   :  { %s1003_s21 = scalar_lea.vmem %s41_s13, 128  ;;  %p1008_p6 = scmp.lt.s32.totalorder %s41_s13, %s41_s13 }
  0x2b   :  { %p1004_p5 = scmp.ne.s32.totalorder %s41_s13, %s1003_s21  ;;  %p1009_p7 = scmp.lt.s32.totalorder %s1003_s21, %s1003_s21 }
  0x2d   :  { %p1010_p8 = por %p1009_p7, %p1008_p6 }
  0x2f   :  { %p1011_p9 = pnand %p1010_p8, %p1004_p5 }
  0x31   :  { %1014 = shalt.err (!%p1011_p9)
}
  0x32   :  { %43 = dma.hbm_to_vmem [thread:$0]  %s1165_s2, 128, %s41_s13, [#allocation6]  }
  0x33   :  { %1015 = dma.done.wait [#allocation4], 256  }
  0x34   :  { %1016 = vsyncadd [#allocation4], 4294967040 }
  0x35   :  { %1017 = dma.done.wait [#allocation6], 5248  }
  0x36   :  { %1018 = vsyncadd [#allocation6], 4294962048  ;;  %vm54_vm0 = vcmask 1048440   ;;  %v1026_v0 = vmov 0.0   ;;  %vm1027_vm1 = vmmov 0   ;;  %v1028_v1 = vmov 0  }
  0x37   :  { %773 = vmatprep.subr.bf16.mxu0 %v1026_v0  ;;  %789 = vmatprep.mubr.msk.bf16.mxu0 %vm1027_vm1, %v1026_v0  ;;  %55 = vst.msk [vmem:[#allocation2] sm:$0xff] %vm54_vm0, %v1028_v1  ;;  %v885_v2 = vld [vmem:[#allocation5] sm:$0xff]   ;;  %v886_v3 = vld [vmem:[#allocation5 + $0x8] sm:$0xff]   ;;  %v887_v4 = vld [vmem:[#allocation5 + $0x10] sm:$0xff]   ;;  %vm59_vm2 = vcmask 908288   ;;  %v79_v26 = vlaneseq  ;;  %s1029_s2 = smov 1  }
  0x38   :  { %793 = vmatprep.subr.bf16.mxu1 %v1026_v0  ;;  %809 = vmatprep.mubr.msk.bf16.mxu1 %vm1027_vm1, %v1026_v0  ;;  %v56_v5 = vld [vmem:[#allocation3] sm:$0xff]  ;;  %v57_v6 = vld [vmem:[#allocation3 + $0x8] sm:$0xff]  ;;  %v893_v8 = vld [vmem:[#allocation5 + $0x40] sm:$0xff]   ;;  %s1030_s23 = smov 127   ;;  %vm674_vm5 = vcmask 7168   ;;  %vm679_vm6 = vcmask 15368  }
  0x39   :  { %774 = vmatpush3.bf16.msra.mxu0 %v885_v2  ;;  %v58_v7 = vpack.c.bf16 %v57_v6, %v56_v5  ;;  %v888_v9 = vld [vmem:[#allocation5 + $0x18] sm:$0xff]   ;;  %794 = vmatpush3.bf16.msra.mxu1 %v893_v8  ;;  %v894_v10 = vld [vmem:[#allocation5 + $0x48] sm:$0xff]   ;;  %v889_v11 = vld [vmem:[#allocation5 + $0x20] sm:$0xff]   ;;  %v1115_v27 = vshrl.u32 %v79_v26, 7 }
  0x3a   :  { %775 = vmatprep.subr.bf16.mxu0 %v1026_v0  ;;  %795 = vmatprep.subr.bf16.mxu1 %v1026_v0  ;;  %v895_v12 = vld [vmem:[#allocation5 + $0x50] sm:$0xff]   ;;  %v890_v13 = vld [vmem:[#allocation5 + $0x28] sm:$0xff]   ;;  %v896_v14 = vld [vmem:[#allocation5 + $0x58] sm:$0xff]  }
  0x3b   :  { %60 = vst.msk [vmem:[#allocation2] sm:$0xff] %vm59_vm2, %v58_v7  ;;  %v891_v15 = vld [vmem:[#allocation5 + $0x30] sm:$0xff]   ;;  %v892_v16 = vld [vmem:[#allocation5 + $0x38] sm:$0xff]   ;;  %v897_v18 = vld [vmem:[#allocation5 + $0x60] sm:$0xff]   ;;  %v81_v28 = vsub.s32 0, %v1115_v27  ;;  %v194_v48 = vsub.s32 1, %v1115_v27 }
  0x3c   :  { %v898_v19 = vld [vmem:[#allocation5 + $0x68] sm:$0xff]   ;;  %v899_v20 = vld [vmem:[#allocation5 + $0x70] sm:$0xff]   ;;  %v900_v21 = vld [vmem:[#allocation5 + $0x78] sm:$0xff]  }
  0x3d   :  { %776 = vmatpush3.bf16.msra.mxu0 %v886_v3  ;;  %796 = vmatpush3.bf16.msra.mxu1 %v894_v10  ;;  %v901_v22 = vld [vmem:[#allocation5 + $0x80] sm:$0xff]   ;;  %v902_v23 = vld [vmem:[#allocation5 + $0x88] sm:$0xff]   ;;  %v903_v24 = vld [vmem:[#allocation5 + $0x90] sm:$0xff]  }
  0x3e   :  { %777 = vmatprep.subr.bf16.mxu0 %v1026_v0  ;;  %797 = vmatprep.subr.bf16.mxu1 %v1026_v0  ;;  %v904_v25 = vld [vmem:[#allocation5 + $0x98] sm:$0xff]   ;;  %v1118_v29 = vld [vmem:[#allocation7] sm:$0x1f]  ;;  %v906_v41 = vld [vmem:[#allocation5 + $0xa8] sm:$0xff]  }
  0x3f   :  { %v82_v30 = vrot.slane %v1118_v29, %v81_v28  ;;  %v905_v40 = vld [vmem:[#allocation5 + $0xa0] sm:$0xff]   ;;  %v907_v42 = vld [vmem:[#allocation5 + $0xb0] sm:$0xff]   ;;  %v908_v43 = vld [vmem:[#allocation5 + $0xb8] sm:$0xff]   ;;  %v195_v49 = vrot.slane %v1118_v29, %v194_v48 }
  0x40   :  { %v909_v44 = vld [vmem:[#allocation5 + $0xc0] sm:$0xff]   ;;  %v910_v45 = vld [vmem:[#allocation5 + $0xc8] sm:$0xff]   ;;  %v911_v46 = vld [vmem:[#allocation5 + $0xd0] sm:$0xff]  }
  0x41   :  { %778 = vmatpush3.bf16.msra.mxu0 %v887_v4  ;;  %798 = vmatpush3.bf16.msra.mxu1 %v895_v12  ;;  %v912_v47 = vld [vmem:[#allocation5 + $0xd8] sm:$0xff]   ;;  %v913_v59 = vld [vmem:[#allocation5 + $0xe0] sm:$0xff]   ;;  %v914_v60 = vld [vmem:[#allocation5 + $0xe8] sm:$0xff]   ;;  %v307_v4 = vsub.s32 2, %v1115_v27 }
  0x42   :  { %779 = vmatprep.subr.bf16.mxu0 %v1026_v0  ;;  %799 = vmatprep.subr.bf16.mxu1 %v1026_v0  ;;  %v61_v17 = vld [vmem:[#allocation2] sm:$0xff]  ;;  %v915_v61 = vld [vmem:[#allocation5 + $0xf0] sm:$0xff]   ;;  %v916_v62 = vld [vmem:[#allocation5 + $0xf8] sm:$0xff]  }
  0x43   :  { %v917_v63 = vld [vmem:[#allocation5 + $0x100] sm:$0xff]   ;;  %v918_v1 = vld [vmem:[#allocation5 + $0x108] sm:$0xff]   ;;  %v919_v2 = vld [vmem:[#allocation5 + $0x110] sm:$0xff]   ;;  %v308_v5 = vrot.slane %v1118_v29, %v307_v4 }
  0x44   :  { %v920_v3 = vld [vmem:[#allocation5 + $0x118] sm:$0xff]  }
  0x45   :  { %780 = vmatpush3.bf16.msra.mxu0 %v888_v9  ;;  %800 = vmatpush3.bf16.msra.mxu1 %v896_v14 }
  0x46   :  { %781 = vmatprep.subr.bf16.mxu0 %v1026_v0  ;;  %801 = vmatprep.subr.bf16.mxu1 %v1026_v0 }
  0x49   :  { %782 = vmatpush3.bf16.msra.mxu0 %v889_v11  ;;  %802 = vmatpush3.bf16.msra.mxu1 %v897_v18  ;;  %v924_v18 = vld [vmem:[#allocation5 + $0x138] sm:$0xff]  }
  0x4a   :  { %783 = vmatprep.subr.bf16.mxu0 %v1026_v0  ;;  %803 = vmatprep.subr.bf16.mxu1 %v1026_v0 }
  0x4d   :  { %784 = vmatpush3.bf16.msra.mxu0 %v890_v13  ;;  %804 = vmatpush3.bf16.msra.mxu1 %v898_v19  ;;  %v420_v19 = vsub.s32 3, %v1115_v27 }
  0x4e   :  { %785 = vmatprep.subr.bf16.mxu0 %v1026_v0  ;;  %805 = vmatprep.subr.bf16.mxu1 %v1026_v0 }
  0x51   :  { %786 = vmatpush3.bf16.msra.mxu0 %v891_v15  ;;  %806 = vmatpush3.bf16.msra.mxu1 %v899_v20  ;;  %v921_v15 = vld [vmem:[#allocation5 + $0x120] sm:$0xff]   ;;  %v421_v20 = vrot.slane %v1118_v29, %v420_v19 }
  0x52   :  { %787 = vmatprep.subr.bf16.mxu0 %v1026_v0  ;;  %807 = vmatprep.subr.bf16.mxu1 %v1026_v0 }
  0x55   :  { %788 = vmatpush3.bf16.msra.mxu0 %v892_v16  ;;  %808 = vmatpush3.bf16.msra.mxu1 %v900_v21  ;;  %v922_v16 = vld [vmem:[#allocation5 + $0x128] sm:$0xff]  }
  0x56   :  { %813 = vmatprep.subr.bf16.mxu0 %v1026_v0  ;;  %833 = vmatprep.subr.bf16.mxu1 %v1026_v0 }
  0x58   :  { %790 = vmatmul.mubr.bf16.vlgmr.msra.gmra.mrb[0].mxu0 %v61_v17  ;;  %v923_v17 = vld [vmem:[#allocation5 + $0x130] sm:$0xff]  }
  0x59   :  { %829 = vmatprep.mubr.msk.bf16.mxu0 %vm1027_vm1, %v1026_v0  ;;  %814 = vmatpush3.bf16.msra.mxu0 %v901_v22 }
  0x5a   :  { %815 = vmatprep.subr.bf16.mxu0 %v1026_v0 }
  0x5d   :  { %816 = vmatpush3.bf16.msra.mxu0 %v902_v23 }
  0x5e   :  { %817 = vmatprep.subr.bf16.mxu0 %v1026_v0 }
  0x61   :  { %818 = vmatpush3.bf16.msra.mxu0 %v903_v24 }
  0x62   :  { %819 = vmatprep.subr.bf16.mxu0 %v1026_v0 }
  0x65   :  { %820 = vmatpush3.bf16.msra.mxu0 %v904_v25 }
  0x66   :  { %821 = vmatprep.subr.bf16.mxu0 %v1026_v0 }
  0x69   :  { %822 = vmatpush3.bf16.msra.mxu0 %v905_v40 }
  0x6a   :  { %823 = vmatprep.subr.bf16.mxu0 %v1026_v0 }
  0x6d   :  { %824 = vmatpush3.bf16.msra.mxu0 %v906_v41 }
  0x6e   :  { %825 = vmatprep.subr.bf16.mxu0 %v1026_v0 }
  0x71   :  { %826 = vmatpush3.bf16.msra.mxu0 %v907_v42 }
  0x72   :  { %827 = vmatprep.subr.bf16.mxu0 %v1026_v0 }
  0x75   :  { %828 = vmatpush3.bf16.msra.mxu0 %v908_v43 }
  0x76   :  { %853 = vmatprep.subr.bf16.mxu0 %v1026_v0 }
 0x12b   :  { %v165_v31 = vpop.f32.mrb[0].mxu0 }
 0x12c   :  { %v166_v32 = vadd.f32 %v165_v31, %v82_v30  ;;  %v791_v33 = vpop.f32.mrb[1].mxu0 }
 0x12d   :  { %v168_v34 = vpop.f32.mrb[2].mxu0 }
 0x12e   :  { %v169_v35 = vadd.f32 %v168_v34, %v82_v30  ;;  %v792_v36 = vpop.f32.mrb[3].mxu0  ;;  %925 = vtanh.f32 %v166_v32  ;;  %v533_v32 = vsub.s32 4, %v1115_v27 }
 0x130   :  { %927 = vtanh.f32 %v169_v35 }
 0x138   :  { %v926_v37 = vpop.eup %925 }
 0x13a   :  { %v928_v38 = vpop.eup %927 }
 0x13b   :  { %v174_v39 = vpack.c.bf16 %v928_v38, %v926_v37 }
 0x13d   :  { %810 = vmatmul.mubr.bf16.vlgmr.msra.gmra.mrb[0].mxu1 %v174_v39 }
 0x13e   :  { %849 = vmatprep.mubr.msk.bf16.mxu1 %vm1027_vm1, %v1026_v0  ;;  %834 = vmatpush3.bf16.msra.mxu1 %v909_v44 }
 0x13f   :  { %835 = vmatprep.subr.bf16.mxu1 %v1026_v0 }
 0x142   :  { %836 = vmatpush3.bf16.msra.mxu1 %v910_v45 }
 0x143   :  { %837 = vmatprep.subr.bf16.mxu1 %v1026_v0 }
 0x146   :  { %838 = vmatpush3.bf16.msra.mxu1 %v911_v46 }
 0x147   :  { %839 = vmatprep.subr.bf16.mxu1 %v1026_v0 }
 0x14a   :  { %840 = vmatpush3.bf16.msra.mxu1 %v912_v47 }
 0x14b   :  { %841 = vmatprep.subr.bf16.mxu1 %v1026_v0 }
 0x14e   :  { %842 = vmatpush3.bf16.msra.mxu1 %v913_v59 }
 0x14f   :  { %843 = vmatprep.subr.bf16.mxu1 %v1026_v0 }
 0x152   :  { %844 = vmatpush3.bf16.msra.mxu1 %v914_v60 }
 0x153   :  { %845 = vmatprep.subr.bf16.mxu1 %v1026_v0 }
 0x156   :  { %846 = vmatpush3.bf16.msra.mxu1 %v915_v61 }
 0x157   :  { %847 = vmatprep.subr.bf16.mxu1 %v1026_v0 }
 0x15a   :  { %848 = vmatpush3.bf16.msra.mxu1 %v916_v62 }
 0x210   :  { %v278_v50 = vpop.f32.mrb[0].mxu1 }
 0x211   :  { %v279_v51 = vadd.f32 %v278_v50, %v195_v49  ;;  %v811_v52 = vpop.f32.mrb[1].mxu1 }
 0x212   :  { %v281_v53 = vpop.f32.mrb[2].mxu1 }
 0x213   :  { %v282_v54 = vadd.f32 %v281_v53, %v195_v49  ;;  %v812_v55 = vpop.f32.mrb[3].mxu1  ;;  %929 = vtanh.f32 %v279_v51 }
 0x215   :  { %931 = vtanh.f32 %v282_v54 }
 0x21d   :  { %v930_v56 = vpop.eup %929 }
 0x21f   :  { %v932_v57 = vpop.eup %931 }
 0x220   :  { %v287_v58 = vpack.c.bf16 %v932_v57, %v930_v56 }
 0x222   :  { %830 = vmatmul.mubr.bf16.vlgmr.msra.gmra.mrb[4].mxu0 %v287_v58 }
 0x223   :  { %869 = vmatprep.mubr.msk.bf16.mxu0 %vm1027_vm1, %v1026_v0  ;;  %854 = vmatpush3.bf16.msra.mxu0 %v917_v63 }
 0x224   :  { %855 = vmatprep.subr.bf16.mxu0 %v1026_v0 }
 0x227   :  { %856 = vmatpush3.bf16.msra.mxu0 %v918_v1 }
 0x228   :  { %857 = vmatprep.subr.bf16.mxu0 %v1026_v0 }
 0x22b   :  { %858 = vmatpush3.bf16.msra.mxu0 %v919_v2 }
 0x22c   :  { %859 = vmatprep.subr.bf16.mxu0 %v1026_v0 }
 0x22f   :  { %860 = vmatpush3.bf16.msra.mxu0 %v920_v3 }
 0x230   :  { %861 = vmatprep.subr.bf16.mxu0 %v1026_v0 }
 0x233   :  { %862 = vmatpush3.bf16.msra.mxu0 %v921_v15 }
 0x234   :  { %863 = vmatprep.subr.bf16.mxu0 %v1026_v0 }
 0x237   :  { %864 = vmatpush3.bf16.msra.mxu0 %v922_v16 }
 0x238   :  { %865 = vmatprep.subr.bf16.mxu0 %v1026_v0 }
 0x23b   :  { %866 = vmatpush3.bf16.msra.mxu0 %v923_v17 }
 0x23c   :  { %867 = vmatprep.subr.bf16.mxu0 %v1026_v0  ;;  %v534_v0 = vrot.slane %v1118_v29, %v533_v32 }
 0x23f   :  { %868 = vmatpush3.bf16.msra.mxu0 %v924_v18 }
 0x2f5   :  { %v391_v6 = vpop.f32.mrb[4].mxu0 }
 0x2f6   :  { %v392_v7 = vadd.f32 %v391_v6, %v308_v5  ;;  %v831_v8 = vpop.f32.mrb[5].mxu0 }
 0x2f7   :  { %v394_v9 = vpop.f32.mrb[6].mxu0 }
 0x2f8   :  { %v395_v10 = vadd.f32 %v394_v9, %v308_v5  ;;  %v832_v11 = vpop.f32.mrb[7].mxu0  ;;  %933 = vtanh.f32 %v392_v7 }
 0x2fa   :  { %935 = vtanh.f32 %v395_v10 }
 0x302   :  { %v934_v12 = vpop.eup %933 }
 0x304   :  { %v936_v13 = vpop.eup %935 }
 0x305   :  { %v400_v14 = vpack.c.bf16 %v936_v13, %v934_v12 }
 0x307   :  { %850 = vmatmul.mubr.bf16.vlgmr.msra.gmra.mrb[4].mxu1 %v400_v14 }
 0x3da   :  { %v504_v21 = vpop.f32.mrb[4].mxu1 }
 0x3db   :  { %v505_v22 = vadd.f32 %v504_v21, %v421_v20  ;;  %v851_v23 = vpop.f32.mrb[5].mxu1 }
 0x3dc   :  { %v507_v24 = vpop.f32.mrb[6].mxu1 }
 0x3dd   :  { %v508_v25 = vadd.f32 %v507_v24, %v421_v20  ;;  %v852_v26 = vpop.f32.mrb[7].mxu1  ;;  %937 = vtanh.f32 %v505_v22 }
 0x3df   :  { %939 = vtanh.f32 %v508_v25 }
 0x3e7   :  { %v938_v28 = vpop.eup %937 }
 0x3e9   :  { %v940_v30 = vpop.eup %939 }
 0x3ea   :  { %v513_v31 = vpack.c.bf16 %v940_v30, %v938_v28 }
 0x3ec   :  { %870 = vmatmul.mubr.bf16.vlgmr.msra.gmra.mrb[8].mxu0 %v513_v31 }
 0x4bf   :  { %v617_v33 = vpop.f32.mrb[8].mxu0 }
 0x4c0   :  { %v618_v34 = vadd.f32 %v617_v33, %v534_v0  ;;  %v871_v35 = vpop.f32.mrb[9].mxu0 }
 0x4c1   :  { %v620_v36 = vpop.f32.mrb[10].mxu0 }
 0x4c2   :  { %626 = vrot.lane.b32.xlu0 %v618_v34, %s1029_s2  ;;  %v872_v37 = vpop.f32.mrb[11].mxu0  ;;  %v621_v38 = vadd.f32 %v620_v36, %v534_v0 }
 0x4c6   :  { %628 = vrot.lane.b32.xlu0 %v621_v38, %s1029_s2 }
 0x534   :  { %v627_v39 = vpop.permute.xlu0 %626 }
 0x535   :  { %v632_v40 = vsub.f32 %v618_v34, %v627_v39 }
 0x537   :  { %v636_v41 = vand.u32 2147483647, %v632_v40  ;;  %v634_v59 = vmax.f32 %v632_v40, 0.0 }
 0x538   :  { %v629_v42 = vpop.permute.xlu0 %628 }
 0x539   :  { %v638_v43 = vsub.f32 0.0, %v636_v41  ;;  %v633_v44 = vsub.f32 %v621_v38, %v629_v42 }
 0x53b   :  { %v640_v45 = vmul.f32 1.442695, %v638_v43  ;;  %v637_v46 = vand.u32 2147483647, %v633_v44  ;;  %v635_v3 = vmax.f32 %v633_v44, 0.0 }
 0x53d   :  { %941 = vpow2.f32 %v640_v45  ;;  %v639_v27 = vsub.f32 0.0, %v637_v46 }
 0x53f   :  { %v642_v29 = vmul.f32 1.442695, %v639_v27 }
 0x541   :  { %943 = vpow2.f32 %v642_v29 }
 0x547   :  { %v942_v47 = vpop.eup %941 }
 0x548   :  { %v644_v48 = vadd.f32 1.0, %v942_v47  ;;  %v647_v51 = vmul.f32 -0.5, %v942_v47  ;;  %v650_v54 = vand.u32 2147483647, %v942_v47 }
 0x54a   :  { %945 = vlog2.f32 %v644_v48  ;;  %v648_v53 = vadd.f32 1.0, %v647_v51  ;;  %vm651_vm3 = vcmp.lt.f32.partialorder %v650_v54, 0.0004427343 }
 0x54b   :  { %v944_v49 = vpop.eup %943 }
 0x54c   :  { %v653_v50 = vadd.f32 1.0, %v944_v49  ;;  %v656_v52 = vmul.f32 -0.5, %v944_v49  ;;  %v649_v58 = vmul.f32 %v942_v47, %v648_v53  ;;  %v659_v60 = vand.u32 2147483647, %v944_v49 }
 0x54e   :  { %947 = vlog2.f32 %v653_v50  ;;  %v657_v56 = vadd.f32 1.0, %v656_v52  ;;  %vm660_vm4 = vcmp.lt.f32.partialorder %v659_v60, 0.0004427343 }
 0x550   :  { %v658_v2 = vmul.f32 %v944_v49, %v657_v56 }
 0x554   :  { %v946_v55 = vpop.eup %945 }
 0x555   :  { %v646_v57 = vmul.f32 0.6931472, %v946_v55 }
 0x557   :  { %v652_v61 = vsel %vm651_vm3, %v649_v58, %v646_v57 }
 0x558   :  { %v948_v62 = vpop.eup %947  ;;  %v662_v63 = vadd.f32 %v652_v61, %v634_v59 }
 0x559   :  { %v655_v1 = vmul.f32 0.6931472, %v948_v62 }
 0x55a   :  { %v664_v4 = vsub.f32 0.0, %v662_v63  ;;  %v677_v5 = vsub.f32 %v632_v40, %v662_v63 }
 0x55b   :  { %v661_v6 = vsel %vm660_vm4, %v658_v2, %v655_v1 }
 0x55c   :  { %v663_v7 = vadd.f32 %v661_v6, %v635_v3  ;;  %668 = vrot.lane.b32.xlu1 %v664_v4, %s1030_s23 }
 0x55e   :  { %v678_v8 = vsub.f32 %v633_v44, %v663_v7  ;;  %v665_v9 = vsub.f32 0.0, %v663_v7 }
 0x560   :  { %670 = vrot.lane.b32.xlu1 %v665_v9, %s1030_s23 }
 0x5ce   :  { %v669_v10 = vpop.permute.xlu1 %668 }
 0x5cf   :  { %675 = vst.msk [vmem:[%s1166_s3] sm:$0xff] %vm674_vm5, %v669_v10 }
 0x5d0   :  { %680 = vst.msk [vmem:[%s1166_s3] sm:$0xff] %vm679_vm6, %v677_v5 }
 0x5d2   :  { %v671_v11 = vpop.permute.xlu1 %670 }
 0x5d3   :  { %676 = vst.msk [vmem:[%s1166_s3 + $0x8] sm:$0xff] %vm674_vm5, %v671_v11 }
 0x5d4   :  { %681 = vst.msk [vmem:[%s1166_s3 + $0x8] sm:$0xff] %vm679_vm6, %v678_v8 }
 0x5d5   :  { %686 = vsyncpa [#allocation4], 1 }
 0x5d6   :  { %687 = vsyncpa [#allocation6], 1 }

</bundles_post_ra>
